<compile_context>
chip_gen: v5e
topology: v5e:2x2
jax: 0.10.0
libtpu: 0.0.40
codegen_flags: <defaults>
</compile_context>

<pallas_src>
import jax
import jax.numpy as jnp
from jax.experimental import pallas as pl
from jax.experimental.pallas import tpu as pltpu

EPS = 1e-5

# Per-buffer x-block byte targets.  Double-buffered in + out blocks plus the two
# (1, block_cols) f32 param blocks stay well under the explicit 48 MiB VMEM
# limit below (itself under v7x's 64 MiB physical VMEM per core, and far under
# v5e/v6e's 128 MiB — so the limit is safe on every generation).
_TARGET_BLOCK_BYTES_1TC = 8 * 1024 * 1024     # v5e / v6e: already at HBM roofline
_TARGET_BLOCK_BYTES_2TC = 10 * 1024 * 1024    # v7x: 3.2 TB/s HBM wants bigger steps
_MAX_BLOCK_COLS = 256 * 1024                  # caps f32 param double-buffers at 4 MiB
_VMEM_LIMIT_BYTES = 48 * 1024 * 1024
_MIN_SPLIT_BLOCK_BYTES = 1 * 1024 * 1024      # don't shard sub-1MiB blocks across TCs

# Minimum sublane multiple per element size (narrow dtypes pack along sublanes).
_SUBLANE = {4: 8, 2: 16, 1: 32}


def _round_down(v, m):
    return (v // m) * m


def _num_tensorcores():
    """Best-effort TensorCore count of the local chip (for megacore balancing)."""
    try:
        kind = jax.devices()[0].device_kind.lower()
    except Exception:
        return 1
    # v4 / v5p (megacore) and v7x have 2 TensorCores per chip; v5e / v6e have 1.
    if "v5p" in kind or "v4" in kind or "v7" in kind:
        return 2
    return 1


def _choose_blocks(M, L, itemsize, num_cores):
    """Pick (block_rows, block_cols) for an (M, L) elementwise-affine stream."""
    sub = _SUBLANE.get(itemsize, 8)
    target = _TARGET_BLOCK_BYTES_2TC if num_cores > 1 else _TARGET_BLOCK_BYTES_1TC

    # Lane (last) dim: prefer full width (one contiguous HBM burst per block row)
    # when it fits the budget, otherwise the largest multiple of 128 that does.
    # Only tiny tensors (L <= 256) ever fall back to a non-128-multiple width.
    cols_budget = min(_MAX_BLOCK_COLS,
                      max(128, target // (itemsize * min(M, sub))))
    if L <= 256:
        block_cols = L
    elif L <= cols_budget:
        block_cols = L if L % 128 == 0 else _round_down(L, 128)
    else:
        block_cols = _round_down(cols_budget, 128)

    # Sublane (row) dim: grow toward the byte target; multiple of `sub`, or the
    # full extent (always a legal block shape).
    rows_budget = max(1, target // (block_cols * itemsize))
    if M <= max(rows_budget, sub):
        block_rows = M
    else:
        block_rows = max(sub, _round_down(rows_budget, sub))

    # Megacore balancing (generation-gated): on 2-TC chips aim for >= 2 grid
    # steps per core, but never shrink blocks below _MIN_SPLIT_BLOCK_BYTES so
    # 1-TC chips / small tensors don't pay extra per-step overhead.
    if num_cores > 1:
        for _ in range(8):
            steps = pl.cdiv(M, block_rows) * pl.cdiv(L, block_cols)
            if steps >= 2 * num_cores:
                break
            if block_rows * block_cols * itemsize <= _MIN_SPLIT_BLOCK_BYTES:
                break
            if block_cols >= 256:
                block_cols = max(128, _round_down(block_cols // 2, 128))
            elif block_rows > sub:
                block_rows = max(sub, _round_down(block_rows // 2, sub))
            else:
                break

    return block_rows, block_cols


def _frozen_bn_kernel(x_ref, scale_ref, shift_ref, o_ref):
    # x block: (block_rows, block_cols); scale/shift: (1, block_cols) f32 rows
    # broadcast down the sublanes (stride-0 read).  The affine runs in f32
    # (matches PyTorch's Half*Float -> Float promotion); only the store casts
    # back to x.dtype.  Pure VPU streaming work; the kernel is HBM-bound.
    x = x_ref[...].astype(jnp.float32)
    o_ref[...] = (x * scale_ref[...] + shift_ref[...]).astype(o_ref.dtype)


@jax.jit
def frozen_batch_norm_2d(x_nchw, weight, bias, running_mean, running_var):
    """FrozenBatchNorm2d forward.  x_nchw: (N, C, H, W); params: (C,)."""
    N, C, H, W = x_nchw.shape
    L = C * H * W                        # lane axis: contiguous per-sample extent
    x2d = x_nchw.reshape(N, L)           # free view of the contiguous NCHW tensor

    # O(C) per-channel precompute in f32 (identical math to the PyTorch forward).
    w32 = weight.astype(jnp.float32)
    b32 = bias.astype(jnp.float32)
    rm32 = running_mean.astype(jnp.float32)
    rv32 = running_var.astype(jnp.float32)
    scale = w32 * jax.lax.rsqrt(rv32 + EPS)              # (C,)
    shift = b32 - rm32 * scale                           # (C,)
    # Flat index within one sample is c*H*W + h*W + w -> repeat per channel.
    scale_row = jnp.repeat(scale, H * W).reshape(1, L)   # (1, C*H*W) f32
    shift_row = jnp.repeat(shift, H * W).reshape(1, L)   # (1, C*H*W) f32

    num_cores = _num_tensorcores()
    block_rows, block_cols = _choose_blocks(N, L, x2d.dtype.itemsize, num_cores)
    grid_c = pl.cdiv(L, block_cols)
    grid_r = pl.cdiv(N, block_rows)

    # Row axis innermost: the (0, j) param blocks keep the same block index for
    # the whole inner row sweep, so Pallas fetches each param block only once
    # per column block instead of once per grid step.
    x_spec = pl.BlockSpec((block_rows, block_cols), lambda j, i: (i, j))
    p_spec = pl.BlockSpec((1, block_cols), lambda j, i: (0, j))

    out2d = pl.pallas_call(
        _frozen_bn_kernel,
        out_shape=jax.ShapeDtypeStruct((N, L), x2d.dtype),
        grid_spec=pltpu.PrefetchScalarGridSpec(
            num_scalar_prefetch=0,
            grid=(grid_c, grid_r),
            in_specs=[x_spec, p_spec, p_spec],
            out_specs=x_spec,
        ),
        compiler_params=pltpu.CompilerParams(
            dimension_semantics=("parallel", "parallel"),
            vmem_limit_bytes=_VMEM_LIMIT_BYTES,
        ),
    )(x2d, scale_row, shift_row)

    # TODO(synk): at the backbone level, fold scale/shift into the preceding
    # frozen conv's weights/bias (or fuse the trailing ReLU into this kernel)
    # to remove this extra HBM read+write of the activation tensor entirely.
    return out2d.reshape(N, C, H, W)


if __name__ == "__main__":
    key = jax.random.PRNGKey(0)
    N, C, H, W = 2, 4, 16, 16

    kx, kw, kb, km, kv = jax.random.split(key, 5)
    x = jax.random.normal(kx, (N, C, H, W), dtype=jnp.float32)

    # Deterministic "frozen" buffers (module init is ones/zeros; perturb them
    # deterministically so the test is non-trivial).
    weight = jnp.ones((C,), jnp.float32) + 0.1 * jax.random.normal(kw, (C,), jnp.float32)
    bias = jnp.zeros((C,), jnp.float32) + 0.1 * jax.random.normal(kb, (C,), jnp.float32)
    running_mean = 0.1 * jax.random.normal(km, (C,), jnp.float32)
    running_var = jnp.ones((C,), jnp.float32) + 0.1 * jnp.abs(
        jax.random.normal(kv, (C,), jnp.float32))

    out = frozen_batch_norm_2d(x, weight, bias, running_mean, running_var)
    out = jax.block_until_ready(out)

    # Pure-JAX reference (mirrors the PyTorch forward exactly, NCHW broadcast).
    w4 = weight.reshape(1, C, 1, 1)
    b4 = bias.reshape(1, C, 1, 1)
    rv4 = running_var.reshape(1, C, 1, 1)
    rm4 = running_mean.reshape(1, C, 1, 1)
    ref_scale = w4 * jax.lax.rsqrt(rv4 + EPS)
    ref = x * ref_scale + (b4 - rm4 * ref_scale)

    assert out.shape == (N, C, H, W)
    assert out.dtype == jnp.float32
    assert jnp.allclose(out, ref, atol=1e-5, rtol=1e-5)

    print("KERNEL_OK")
</pallas_src>

<mosaic_0001>
module attributes {stable_mosaic.version = 11 : i64} {
  func.func @_frozen_bn_kernel(%arg0: i32, %arg1: i32, %arg2: memref<2x1024xf32, #tpu.memory_space<vmem>>, %arg3: memref<1x1024xf32, #tpu.memory_space<vmem>>, %arg4: memref<1x1024xf32, #tpu.memory_space<vmem>>, %arg5: memref<2x1024xf32, #tpu.memory_space<vmem>>) attributes {dimension_semantics = [#tpu.dimension_semantics<parallel>, #tpu.dimension_semantics<parallel>], iteration_bounds = array<i64: 1, 1>, scalar_prefetch = 0 : i64, scratch_operands = 0 : i64, tpu.core_type = #tpu.core_type<tc>, window_params = [{transform_indices = @transform_0, window_bounds = array<i64: 2, 1024>}, {transform_indices = @transform_1, window_bounds = array<i64: 1, 1024>}, {transform_indices = @transform_2, window_bounds = array<i64: 1, 1024>}, {transform_indices = @transform_3, window_bounds = array<i64: 2, 1024>}]} {
    %c0 = arith.constant 0 : index
    %c0_0 = arith.constant 0 : index
    %0 = vector.load %arg2[%c0, %c0_0] : memref<2x1024xf32, #tpu.memory_space<vmem>>, vector<2x1024xf32>
    %c0_1 = arith.constant 0 : index
    %c0_2 = arith.constant 0 : index
    %1 = vector.load %arg3[%c0_1, %c0_2] : memref<1x1024xf32, #tpu.memory_space<vmem>>, vector<1x1024xf32>
    %2 = vector.broadcast %1 : vector<1x1024xf32> to vector<2x1024xf32>
    %3 = arith.mulf %0, %2 : vector<2x1024xf32>
    %c0_3 = arith.constant 0 : index
    %c0_4 = arith.constant 0 : index
    %4 = vector.load %arg4[%c0_3, %c0_4] : memref<1x1024xf32, #tpu.memory_space<vmem>>, vector<1x1024xf32>
    %5 = vector.broadcast %4 : vector<1x1024xf32> to vector<2x1024xf32>
    %6 = arith.addf %3, %5 : vector<2x1024xf32>
    %c0_5 = arith.constant 0 : index
    %c0_6 = arith.constant 0 : index
    %7 = vector.load %arg5[%c0_5, %c0_6] : memref<2x1024xf32, #tpu.memory_space<vmem>>, vector<2x1024xf32>
    tpu.vector_store %arg5[%c0_5, %c0_6], %6 {strides = array<i32>} : memref<2x1024xf32, #tpu.memory_space<vmem>>, vector<2x1024xf32>,
    return
  }
  func.func @transform_0(%arg0: i32, %arg1: i32) -> (i32, i32) {
    %c0_i32 = arith.constant 0 : i32
    return %arg1, %arg0 : i32, i32
  }
  func.func @transform_1(%arg0: i32, %arg1: i32) -> (i32, i32) {
    %c0_i32 = arith.constant 0 : i32
    %c0_i32_0 = arith.constant 0 : i32
    return %c0_i32, %arg0 : i32, i32
  }
  func.func @transform_2(%arg0: i32, %arg1: i32) -> (i32, i32) {
    %c0_i32 = arith.constant 0 : i32
    %c0_i32_0 = arith.constant 0 : i32
    return %c0_i32, %arg0 : i32, i32
  }
  func.func @transform_3(%arg0: i32, %arg1: i32) -> (i32, i32) {
    %c0_i32 = arith.constant 0 : i32
    return %arg1, %arg0 : i32, i32
  }
}

</mosaic_0001>

<bundles_post_ra>
// kernel: frozen_batch_norm_2d.1
= control target key start
LH: loop header
LB: loop body
LE: loop exit
PB: predicated region body
PF: predicated region fallthrough
CT: control target
= control target key end

     0   :  { %vm32_vm0 = vcmask 1041408   ;;  %vm34_vm1 = vcmask 1045508   ;;  %vm36_vm2 = vcmask 1043456   ;;  %s127_s1 = inlined_call_operand.vmem [shape: f32[1,1024], index: 1, kind: input, shape index: {}]   ;;  %s128_s2 = inlined_call_operand.vmem [shape: f32[1,1024], index: 2, kind: input, shape index: {}]   ;;  %s129_s0 = inlined_call_operand.vmem [shape: f32[2,1024], index: 0, kind: input, shape index: {}]   ;;  %s130_s3 = inlined_call_operand.vmem [shape: f32[2,1024], index: 3, kind: output, shape index: {}]  }
   0x1   :  { %v16_v0 = vld [vmem:[%s127_s1] sm:$0xff]  ;;  %v15_v31 = vld [vmem:[%s129_s0 + $0x8] sm:$0xff] }
   0x2   :  { %v45_v1 = vld [vmem:[%s128_s2] sm:$0xff]  ;;  %v18_v2 = vperm.slane %v16_v0, 0  ;;  %v19_v3 = vperm.slane %v16_v0, 1  ;;  %v20_v4 = vperm.slane %v16_v0, 2  ;;  %v21_v5 = vperm.slane %v16_v0, 3 }
   0x3   :  { %v47_v6 = vperm.slane %v45_v1, 0  ;;  %v48_v7 = vperm.slane %v45_v1, 1  ;;  %v49_v8 = vperm.slane %v45_v1, 2  ;;  %v50_v9 = vperm.slane %v45_v1, 3  ;;  %v14_v14 = vld [vmem:[%s129_s0] sm:$0xff] }
   0x4   :  { %v26_v10 = vrot.slane %v19_v3, 6  ;;  %v27_v11 = vrot.slane %v20_v4, 4  ;;  %v28_v12 = vrot.slane %v21_v5, 2  ;;  %v22_v13 = vperm.slane %v16_v0, 4 }
   0x5   :  { %v55_v15 = vrot.slane %v48_v7, 6  ;;  %v56_v16 = vrot.slane %v49_v8, 4  ;;  %v57_v17 = vrot.slane %v50_v9, 2  ;;  %v23_v18 = vperm.slane %v16_v0, 5 }
   0x6   :  { %v33_v19 = vsel %vm32_vm0, %v18_v2, %v26_v10  ;;  %v35_v20 = vsel %vm34_vm1, %v27_v11, %v28_v12  ;;  %v24_v21 = vperm.slane %v16_v0, 6  ;;  %v25_v22 = vperm.slane %v16_v0, 7 }
   0x7   :  { %v37_v23 = vsel %vm36_vm2, %v33_v19, %v35_v20  ;;  %v61_v24 = vsel %vm32_vm0, %v47_v6, %v55_v15  ;;  %v62_v25 = vsel %vm34_vm1, %v56_v16, %v57_v17  ;;  %v29_v26 = vrot.slane %v23_v18, 6 }
   0x8   :  { %v43_v27 = vmul.f32 %v37_v23, %v14_v14  ;;  %v63_v28 = vsel %vm36_vm2, %v61_v24, %v62_v25  ;;  %v30_v29 = vrot.slane %v24_v21, 4  ;;  %v31_v30 = vrot.slane %v25_v22, 2 }
   0x9   :  { %v38_v32 = vsel %vm32_vm0, %v22_v13, %v29_v26  ;;  %v51_v33 = vperm.slane %v45_v1, 4  ;;  %v52_v34 = vperm.slane %v45_v1, 5  ;;  %v53_v35 = vperm.slane %v45_v1, 6 }
   0xa   :  { %v69_v36 = vadd.f32 %v63_v28, %v43_v27  ;;  %v39_v37 = vsel %vm34_vm1, %v30_v29, %v31_v30  ;;  %v54_v38 = vperm.slane %v45_v1, 7 }
   0xb   :  { %v40_v39 = vsel %vm36_vm2, %v38_v32, %v39_v37  ;;  %v58_v40 = vrot.slane %v52_v34, 6  ;;  %v59_v41 = vrot.slane %v53_v35, 4 }
   0xc   :  { %71 = vst [vmem:[%s130_s3] sm:$0xff] %v69_v36  ;;  %v44_v42 = vmul.f32 %v40_v39, %v15_v31  ;;  %v60_v43 = vrot.slane %v54_v38, 2 }
   0xd   :  { %v64_v44 = vsel %vm32_vm0, %v51_v33, %v58_v40 }
   0xe   :  { %v65_v45 = vsel %vm34_vm1, %v59_v41, %v60_v43 }
   0xf   :  { %v66_v46 = vsel %vm36_vm2, %v64_v44, %v65_v45 }
  0x10   :  { %v70_v47 = vadd.f32 %v66_v46, %v44_v42 }
  0x12   :  { %72 = vst [vmem:[%s130_s3 + $0x8] sm:$0xff] %v70_v47 }

</bundles_post_ra>
